<compile_context>
chip_gen: v5e
topology: v5e:2x2
jax: 0.10.0
libtpu: 0.0.40
codegen_flags: <defaults>
</compile_context>

<pallas_src>
import functools
import math

import jax
import jax.numpy as jnp
from jax.experimental import pallas as pl
from jax.experimental.pallas import tpu as pltpu


def _round_up(x, m):
    return (x + m - 1) // m * m


_RESIDENT_VOCAB_MAX = 8192    # one-hot gather does O(V) MXU work per token; cap it
_ONEHOT_V_CHUNK = 512         # contraction chunk width (bounds the one-hot intermediate)
_GATHER_ROWS_PER_STEP = 128   # fallback: rows gathered per grid step
_GATHER_DMA_WAVE = 8          # fallback: row DMAs kept in flight at once


def _vmem_capacity_bytes():
    try:
        return int(pltpu.get_tpu_info().vmem_capacity_bytes)
    except Exception:
        return 64 << 20       # conservative: v7x per-TensorCore VMEM


# -----------------------------------------------------------------------------
# Primary path: VMEM-resident table, V-chunked one-hot matmul gather on the MXU.
# -----------------------------------------------------------------------------
def _onehot_gather_kernel(idx_ref, emb_ref, out_ref, acc_ref, *, scale, v_pad, v_chunk):
    # idx_ref: (TM, 1) int32 token ids (sublane axis).
    # emb_ref: (V_pad, D_pad) table, whole-array VMEM resident (single copy).
    idx = idx_ref[...]
    tm = idx.shape[0]
    acc_ref[...] = jnp.zeros_like(acc_ref)
    off = 0
    while off < v_pad:                                   # static unroll, few chunks
        size = min(v_chunk, v_pad - off)
        iota = jax.lax.broadcasted_iota(jnp.int32, (tm, size), 1) + off
        # Compare/select in f32 (v5e has no bf16 VALU); cast to the table dtype
        # right before the dot so bf16 tables use the bf16 MXU path.
        onehot = jnp.where(iota == idx, 1.0, 0.0).astype(emb_ref.dtype)
        acc_ref[...] += jnp.dot(onehot, emb_ref[pl.ds(off, size), :],
                                preferred_element_type=jnp.float32)
        off += size
    # sqrt(D) applied once on the f32 accumulator (single VPU multiply), never
    # folded into a low-precision one-hot.
    out_ref[...] = (acc_ref[...] * scale).astype(out_ref.dtype)


def _scale_embedding_resident(flat_idx, emb_table, scale, tm, vmem_cap):
    n = flat_idx.shape[0]
    v, d = emb_table.shape                 # d already padded to a multiple of 128
    v_pad = _round_up(v, 128)
    n_pad = _round_up(n, tm)
    num_tiles = n_pad // tm
    v_chunk = min(_ONEHOT_V_CHUNK, v_pad)

    idx = jnp.pad(flat_idx, (0, n_pad - n)).reshape(n_pad, 1)
    emb = emb_table if v_pad == v else jnp.pad(emb_table, ((0, v_pad - v), (0, 0)))

    itemsize = emb.dtype.itemsize
    est_bytes = (v_pad * d * itemsize        # table: single VMEM-resident copy
                 + 2 * tm * d * itemsize     # double-buffered output tile
                 + 2 * tm * 128 * 4          # double-buffered (TM,1) i32 index tile
                 + tm * d * 4                # f32 accumulator scratch
                 + tm * v_chunk * 4          # one-hot chunk transient
                 + (4 << 20))                # headroom
    vmem_limit = int(min(max(est_bytes, 32 << 20), vmem_cap - (8 << 20)))

    out = pl.pallas_call(
        functools.partial(_onehot_gather_kernel, scale=scale,
                          v_pad=v_pad, v_chunk=v_chunk),
        out_shape=jax.ShapeDtypeStruct((n_pad, d), emb.dtype),
        grid=(num_tiles,),
        in_specs=[
            pl.BlockSpec((tm, 1), lambda i: (i, 0)),               # token-id tile
            pl.BlockSpec(memory_space=pltpu.MemorySpace.VMEM),     # whole table, once
        ],
        out_specs=pl.BlockSpec((tm, d), lambda i: (i, 0)),
        scratch_shapes=[pltpu.VMEM((tm, d), jnp.float32)],
        compiler_params=pltpu.CompilerParams(
            dimension_semantics=("parallel",),   # independent tiles -> 2 TCs on v7x
            vmem_limit_bytes=vmem_limit,
        ),
    )(idx, emb)
    return out[:n]


# -----------------------------------------------------------------------------
# Fallback path: batched manual-DMA row gather (table stays in HBM).
# -----------------------------------------------------------------------------
def _dma_gather_kernel(idx_smem, emb_hbm, out_ref, rows, sems, *, scale, tm_g, wave):
    step = pl.program_id(0)
    base = step * tm_g
    n_waves = tm_g // wave
    for w in range(n_waves):                       # static unroll
        for r in range(wave):                      # issue `wave` row DMAs
            j = w * wave + r
            row = idx_smem[base + j]
            pltpu.make_async_copy(emb_hbm.at[pl.ds(row, 1), :],
                                  rows.at[pl.ds(j, 1), :],
                                  sems.at[r]).start()
        for r in range(wave):                      # drain the wave
            j = w * wave + r
            row = idx_smem[base + j]
            pltpu.make_async_copy(emb_hbm.at[pl.ds(row, 1), :],
                                  rows.at[pl.ds(j, 1), :],
                                  sems.at[r]).wait()
    out_ref[...] = (rows[...].astype(jnp.float32) * scale).astype(out_ref.dtype)


def _scale_embedding_gather(flat_idx, emb_table, scale):
    n = flat_idx.shape[0]
    _, d = emb_table.shape                 # d already padded to a multiple of 128
    tm_g = min(_GATHER_ROWS_PER_STEP, _round_up(n, 8))
    n_pad = _round_up(n, tm_g)
    num_steps = n_pad // tm_g
    idx = jnp.pad(flat_idx, (0, n_pad - n))        # pad rows point at valid row 0

    grid_spec = pltpu.PrefetchScalarGridSpec(
        num_scalar_prefetch=1,
        grid=(num_steps,),
        in_specs=[pl.BlockSpec(memory_space=pl.ANY)],           # table stays in HBM
        out_specs=pl.BlockSpec((tm_g, d), lambda i, idx_ref: (i, 0)),
        scratch_shapes=[
            pltpu.VMEM((tm_g, d), emb_table.dtype),             # gathered-row staging
            pltpu.SemaphoreType.DMA((_GATHER_DMA_WAVE,)),
        ],
    )
    out = pl.pallas_call(
        functools.partial(_dma_gather_kernel, scale=scale, tm_g=tm_g,
                          wave=_GATHER_DMA_WAVE),
        out_shape=jax.ShapeDtypeStruct((n_pad, d), emb_table.dtype),
        grid_spec=grid_spec,
        compiler_params=pltpu.CompilerParams(
            dimension_semantics=("parallel",)),    # rows independent -> 2 TCs on v7x
    )(idx, emb_table)
    return out[:n]


# -----------------------------------------------------------------------------
# Public wrapper.
# -----------------------------------------------------------------------------
def scale_embedding2(indices, emb_table, *, tm=256, force_gather=False):
    """indices: int (B, S); emb_table: (V, D) -> (B, S, D) = emb[idx] * sqrt(D).

    Note: out-of-range token ids are clamped into [0, V-1]; PyTorch's
    nn.Embedding would raise instead (only semantic difference, for bad input).
    """
    b, s = indices.shape
    v, d = emb_table.shape
    n = b * s
    scale = math.sqrt(float(d))   # == torch.sqrt(torch.tensor(embedding_dim))

    flat_idx = jnp.clip(indices.reshape(n).astype(jnp.int32), 0, v - 1)

    # Pad D to a lane-dense multiple of 128 so output stores are unmasked vst slabs.
    d_pad = _round_up(d, 128)
    emb = emb_table if d_pad == d else jnp.pad(emb_table, ((0, 0), (0, d_pad - d)))

    vmem_cap = _vmem_capacity_bytes()
    v_pad = _round_up(v, 128)
    itemsize = emb.dtype.itemsize
    table_bytes = v_pad * d_pad * itemsize

    # Adapt the token-tile size so the per-tile working set stays within ~8 MiB.
    per_row = 2 * d_pad * itemsize + 4 * d_pad + 4 * min(_ONEHOT_V_CHUNK, v_pad) + 1024
    tm_cap = max(8, ((8 << 20) // per_row) // 8 * 8)
    tm_eff = max(8, min(tm, tm_cap, _round_up(n, 8)))
    tm_eff = _round_up(tm_eff, 8)

    use_resident = (not force_gather
                    and v_pad <= _RESIDENT_VOCAB_MAX
                    and table_bytes <= vmem_cap - (24 << 20))

    if use_resident:
        out = _scale_embedding_resident(flat_idx, emb, scale, tm_eff, vmem_cap)
    else:
        # TODO(synk): resident-table row-copy gather for mid-size vocabularies
        # that fit VMEM but exceed the one-hot sweet spot.
        out = _scale_embedding_gather(flat_idx, emb, scale)

    out = out.reshape(b, s, d_pad)
    return out[..., :d] if d_pad != d else out


if __name__ == "__main__":
    # Deterministic synthetic parameters / inputs (small shapes).
    num_embeddings = 64
    embedding_dim = 128
    batch, seq = 2, 8

    key = jax.random.PRNGKey(0)
    k_emb, k_idx = jax.random.split(key)

    # nn.Embedding default init ~ N(0, 1); float32 weights.
    emb_table = jax.random.normal(
        k_emb, (num_embeddings, embedding_dim), dtype=jnp.float32)
    x = jax.random.randint(
        k_idx, (batch, seq), minval=0, maxval=num_embeddings, dtype=jnp.int32)

    out = jax.block_until_ready(scale_embedding2(x, emb_table))

    # Pure-JAX reference for the forward semantics.
    ref = jnp.take(emb_table, x.reshape(-1), axis=0).reshape(
        batch, seq, embedding_dim) * jnp.sqrt(jnp.float32(embedding_dim))
    assert out.shape == (batch, seq, embedding_dim)
    assert out.dtype == jnp.float32
    assert jnp.allclose(out, ref, atol=1e-5, rtol=1e-5)

    # Also exercise the large-vocab fallback (batched manual-DMA row gather).
    out_gather = jax.block_until_ready(
        scale_embedding2(x, emb_table, force_gather=True))
    assert jnp.allclose(out_gather, ref, atol=1e-5, rtol=1e-5)

    print("KERNEL_OK")
</pallas_src>

<mosaic_0001>
module attributes {stable_mosaic.version = 11 : i64} {
  func.func @_onehot_gather_kernel(%arg0: i32, %arg1: memref<16x1xi32, #tpu.memory_space<vmem>>, %arg2: memref<128x128xf32, #tpu.memory_space<vmem>>, %arg3: memref<16x128xf32, #tpu.memory_space<vmem>>, %arg4: memref<16x128xf32, #tpu.memory_space<vmem>>) attributes {dimension_semantics = [#tpu.dimension_semantics<parallel>], iteration_bounds = array<i64: 1>, scalar_prefetch = 0 : i64, scratch_operands = 1 : i64, tpu.core_type = #tpu.core_type<tc>, window_params = [{transform_indices = @transform_0, window_bounds = array<i64: 16, 1>}, {pipeline_mode = #tpu.pipeline_mode<synchronous>, transform_indices = @transform_1, window_bounds = array<i64: 128, 128>}, {transform_indices = @transform_2, window_bounds = array<i64: 16, 128>}]} {
    %c0 = arith.constant 0 : index
    %c0_0 = arith.constant 0 : index
    %0 = vector.load %arg1[%c0, %c0_0] : memref<16x1xi32, #tpu.memory_space<vmem>>, vector<16x1xi32>
    %cst = arith.constant 0.000000e+00 : f32
    %1 = vector.broadcast %cst : f32 to vector<16x128xf32>
    %c0_1 = arith.constant 0 : index
    %c0_2 = arith.constant 0 : index
    %2 = vector.load %arg4[%c0_1, %c0_2] : memref<16x128xf32, #tpu.memory_space<vmem>>, vector<16x128xf32>
    tpu.vector_store %arg4[%c0_1, %c0_2], %1 {strides = array<i32>} : memref<16x128xf32, #tpu.memory_space<vmem>>, vector<16x128xf32>,
    %3 = tpu.iota {dimensions = array<i32: 1>} : vector<16x128xi32>
    %c0_i32 = arith.constant 0 : i32
    %4 = vector.broadcast %c0_i32 : i32 to vector<16x128xi32>
    %5 = arith.addi %3, %4 : vector<16x128xi32>
    %6 = vector.broadcast %0 : vector<16x1xi32> to vector<16x128xi32>
    %7 = arith.cmpi eq, %5, %6 : vector<16x128xi32>
    %cst_3 = arith.constant 1.000000e+00 : f32
    %cst_4 = arith.constant 0.000000e+00 : f32
    %8 = vector.broadcast %cst_3 : f32 to vector<16x128xf32>
    %9 = vector.broadcast %cst_4 : f32 to vector<16x128xf32>
    %10 = arith.select %7, %8, %9 : vector<16x128xi1>, vector<16x128xf32>
    %c0_5 = arith.constant 0 : index
    %c0_6 = arith.constant 0 : index
    %11 = vector.load %arg4[%c0_5, %c0_6] : memref<16x128xf32, #tpu.memory_space<vmem>>, vector<16x128xf32>
    %c0_7 = arith.constant 0 : index
    %c0_8 = arith.constant 0 : index
    %12 = vector.load %arg2[%c0_7, %c0_8] : memref<128x128xf32, #tpu.memory_space<vmem>>, vector<128x128xf32>
    %cst_9 = arith.constant dense<0.000000e+00> : vector<16x128xf32>
    %13 = tpu.matmul %10, %12, %cst_9 {dimension_numbers = #tpu.dot_dimension_numbers<[1], [0], [0], [1], [0, 0, 1, 1], [], []>} : vector<16x128xf32>, vector<128x128xf32>, vector<16x128xf32> -> vector<16x128xf32>
    %14 = arith.addf %11, %13 : vector<16x128xf32>
    %c0_10 = arith.constant 0 : index
    %c0_11 = arith.constant 0 : index
    %15 = vector.load %arg4[%c0_10, %c0_11] : memref<16x128xf32, #tpu.memory_space<vmem>>, vector<16x128xf32>
    tpu.vector_store %arg4[%c0_10, %c0_11], %14 {strides = array<i32>} : memref<16x128xf32, #tpu.memory_space<vmem>>, vector<16x128xf32>,
    %c0_12 = arith.constant 0 : index
    %c0_13 = arith.constant 0 : index
    %16 = vector.load %arg4[%c0_12, %c0_13] : memref<16x128xf32, #tpu.memory_space<vmem>>, vector<16x128xf32>
    %cst_14 = arith.constant 11.3137083 : f32
    %17 = vector.broadcast %cst_14 : f32 to vector<16x128xf32>
    %18 = arith.mulf %16, %17 : vector<16x128xf32>
    %c0_15 = arith.constant 0 : index
    %c0_16 = arith.constant 0 : index
    %19 = vector.load %arg3[%c0_15, %c0_16] : memref<16x128xf32, #tpu.memory_space<vmem>>, vector<16x128xf32>
    tpu.vector_store %arg3[%c0_15, %c0_16], %18 {strides = array<i32>} : memref<16x128xf32, #tpu.memory_space<vmem>>, vector<16x128xf32>,
    return
  }
  func.func @transform_0(%arg0: i32) -> (i32, i32) {
    %c0_i32 = arith.constant 0 : i32
    %c0_i32_0 = arith.constant 0 : i32
    return %arg0, %c0_i32 : i32, i32
  }
  func.func @transform_1(%arg0: i32) -> (i32, i32) {
    %c0_i32 = arith.constant 0 : i32
    %c0_i32_0 = arith.constant 0 : i32
    %c0_i32_1 = arith.constant 0 : i32
    return %c0_i32, %c0_i32_0 : i32, i32
  }
  func.func @transform_2(%arg0: i32) -> (i32, i32) {
    %c0_i32 = arith.constant 0 : i32
    %c0_i32_0 = arith.constant 0 : i32
    return %arg0, %c0_i32 : i32, i32
  }
}

</mosaic_0001>

<bundles_post_ra>
// kernel: tpu_custom_call.1
= control target key start
LH: loop header
LB: loop body
LE: loop exit
PB: predicated region body
PF: predicated region fallthrough
CT: control target
= control target key end

     0   :  { %7 = vsyncpa [#allocation4], 0  ;;  %s230_s0 = inlined_call_operand.vmem [shape: s32[16,1], index: 0, kind: input, shape index: {}]   ;;  %s231_s1 = inlined_call_operand.hbm [shape: f32[128,128], index: 1, kind: input, shape index: {}]   ;;  %s232_s2 = inlined_call_operand.hbm [shape: f32[16,128], index: 2, kind: output, shape index: {}]  }
   0x1   :  { %8 = vsyncpa [#allocation5], 0  ;;  %s15_s11 = sshll.u32 %s231_s1, 4  ;;  %s191_s12 = smov [#allocation3]   ;;  %s16_s11 = int_to_ptr.hbm [resolvable:$true] %s15_s11 }
   0x2   :  { %s17_s13 = sshll.u32 %s191_s12, 4  ;;  %s192_s14 = smov 128   ;;  %s18_s13 = int_to_ptr.vmem [resolvable:$true] %s17_s13 }
   0x3   :  { %s193_s15 = smov 8  }
   0x4   :  { %23 = dma.hbm_to_vmem [thread:$0]  %s16_s11, 2048, %s18_s13, [#allocation4], %s192_s14, %s192_s14, %s193_s15  }
   0x5   :  { %187 = dma.done.wait [#allocation4], 2048  }
   0x6   :  { %188 = vsyncadd [#allocation4], 4294965248  ;;  %v194_v0 = vmov 0   ;;  %v28_v1 = vld [vmem:[%s230_s0] sm:$0xff]  ;;  %v61_v2 = vld [vmem:[#allocation3 + $0x78] sm:$0xff]  ;;  %v32_v19 = vlaneseq  ;;  %v195_v22 = vmov 1.0  }
   0x7   :  { %138 = vset.pattern.permute.xlu0 %v194_v0  ;;  %62 = vmatpush.msra.mxu0 %v61_v2  ;;  %v60_v3 = vld [vmem:[#allocation3 + $0x70] sm:$0xff]  ;;  %v59_v4 = vld [vmem:[#allocation3 + $0x68] sm:$0xff]  ;;  %v58_v5 = vld [vmem:[#allocation3 + $0x60] sm:$0xff]  ;;  %s101_s22 = sshll.u32 %s232_s2, 4  ;;  %s102_s22 = int_to_ptr.hbm [resolvable:$true] %s101_s22 }
   0x8   :  { %35 = vperm.xlu0 %138, %v28_v1   ;;  %116 = vmatpush.msra.mxu1 %v61_v2  ;;  %v29_v6 = vld [vmem:[%s230_s0 + $0x8] sm:$0xff]  ;;  %v57_v7 = vld [vmem:[#allocation3 + $0x58] sm:$0xff]  ;;  %v56_v8 = vld [vmem:[#allocation3 + $0x50] sm:$0xff]  ;;  %v33_v20 = vand.u32 127, %v32_v19  ;;  %s196_s0 = smov [#allocation6]  }
   0x9   :  { %63 = vmatpush.msra.mxu0 %v60_v3  ;;  %v55_v9 = vld [vmem:[#allocation3 + $0x48] sm:$0xff]  ;;  %v54_v10 = vld [vmem:[#allocation3 + $0x40] sm:$0xff]  ;;  %v53_v11 = vld [vmem:[#allocation3 + $0x38] sm:$0xff]  ;;  %s99_s19 = sshll.u32 %s196_s0, 4  ;;  %s100_s19 = int_to_ptr.vmem [resolvable:$true] %s99_s19 }
   0xa   :  { %117 = vmatpush.msra.mxu1 %v60_v3  ;;  %v52_v12 = vld [vmem:[#allocation3 + $0x30] sm:$0xff]  ;;  %v51_v13 = vld [vmem:[#allocation3 + $0x28] sm:$0xff]  ;;  %v50_v14 = vld [vmem:[#allocation3 + $0x20] sm:$0xff] }
   0xb   :  { %64 = vmatpush.msra.mxu0 %v59_v4  ;;  %v49_v15 = vld [vmem:[#allocation3 + $0x18] sm:$0xff]  ;;  %v48_v16 = vld [vmem:[#allocation3 + $0x10] sm:$0xff]  ;;  %v47_v17 = vld [vmem:[#allocation3 + $0x8] sm:$0xff] }
   0xc   :  { %118 = vmatpush.msra.mxu1 %v59_v4  ;;  %v46_v18 = vld [vmem:[#allocation3] sm:$0xff] }
   0xd   :  { %65 = vmatpush.msra.mxu0 %v58_v5 }
   0xe   :  { %119 = vmatpush.msra.mxu1 %v58_v5 }
   0xf   :  { %66 = vmatpush.msra.mxu0 %v57_v7 }
  0x10   :  { %38 = vperm.xlu0 %138, %v29_v6   ;;  %120 = vmatpush.msra.mxu1 %v57_v7 }
  0x11   :  { %67 = vmatpush.msra.mxu0 %v56_v8 }
  0x12   :  { %121 = vmatpush.msra.mxu1 %v56_v8 }
  0x13   :  { %68 = vmatpush.msra.mxu0 %v55_v9 }
  0x14   :  { %122 = vmatpush.msra.mxu1 %v55_v9 }
  0x15   :  { %69 = vmatpush.msra.mxu0 %v54_v10 }
  0x16   :  { %123 = vmatpush.msra.mxu1 %v54_v10 }
  0x17   :  { %70 = vmatpush.msra.mxu0 %v53_v11 }
  0x18   :  { %124 = vmatpush.msra.mxu1 %v53_v11 }
  0x19   :  { %71 = vmatpush.msra.mxu0 %v52_v12 }
  0x1a   :  { %125 = vmatpush.msra.mxu1 %v52_v12 }
  0x1b   :  { %72 = vmatpush.msra.mxu0 %v51_v13 }
  0x1c   :  { %126 = vmatpush.msra.mxu1 %v51_v13 }
  0x1d   :  { %73 = vmatpush.msra.mxu0 %v50_v14 }
  0x1e   :  { %127 = vmatpush.msra.mxu1 %v50_v14 }
  0x1f   :  { %74 = vmatpush.msra.mxu0 %v49_v15 }
  0x20   :  { %128 = vmatpush.msra.mxu1 %v49_v15 }
  0x21   :  { %75 = vmatpush.msra.mxu0 %v48_v16 }
  0x22   :  { %129 = vmatpush.msra.mxu1 %v48_v16 }
  0x23   :  { %76 = vmatpush.msra.mxu0 %v47_v17 }
  0x24   :  { %130 = vmatpush.msra.mxu1 %v47_v17 }
  0x25   :  { %77 = vmatpush.msra.mxu0 %v46_v18 }
  0x26   :  { %131 = vmatpush.msra.mxu1 %v46_v18 }
  0x7a   :  { %v36_v21 = vpop.permute.xlu0 %35 }
  0x7b   :  { %vm40_vm0 = vcmp.eq.s32.totalorder %v33_v20, %v36_v21 }
  0x7c   :  { %114 = vmatmul.msk.f32.vlgmr.msra.gmra.mxu0 %vm40_vm0, %v195_v22 }
  0x82   :  { %v39_v23 = vpop.permute.xlu0 %38 }
  0x83   :  { %vm41_vm1 = vcmp.eq.s32.totalorder %v33_v20, %v39_v23 }
  0x84   :  { %115 = vmatmul.msk.f32.vlgmr.msra.gmra.mxu1 %vm41_vm1, %v195_v22 }
  0xf9   :  { %v79_v24 = vpop.f32.mrf.mxu0 }
  0xfa   :  { %v91_v25 = vmul.f32 11.313708, %v79_v24 }
  0xfc   :  { %93 = vst [vmem:[#allocation6] sm:$0xff] %v91_v25 }
 0x101   :  { %v82_v26 = vpop.f32.mrf.mxu1 }
 0x102   :  { %v92_v27 = vmul.f32 11.313708, %v82_v26 }
 0x104   :  { %94 = vst [vmem:[#allocation6 + $0x8] sm:$0xff] %v92_v27 }
 0x105   :  { %107 = dma.vmem_to_hbm [thread:$0]  %s100_s19, 256, %s102_s22, [#allocation5], %s192_s14, %s192_s14, %s193_s15  }
 0x106   :  { %189 = dma.done.wait [#allocation5], 256  }
 0x107   :  { %190 = vsyncadd [#allocation5], 4294967040 }
 0x108   :  { %112 = vsyncpa [#allocation4], 1 }
 0x109   :  { %113 = vsyncpa [#allocation5], 1 }

</bundles_post_ra>
